<compile_context>
chip_gen: v6e
topology: v6e:2x2x1
jax: 0.10.0
libtpu: 0.0.40
codegen_flags: <defaults>
</compile_context>

<pallas_src>
import functools
import math

import numpy as np
import jax
import jax.numpy as jnp
from jax import lax
from jax.experimental import pallas as pl
from jax.experimental.pallas import tpu as pltpu

_LANES = 128
_SUBLANES = 8
_TARGET_BLOCK_BYTES = 4 * 1024 * 1024  # per-input-block budget (x2 double-buffer)


def _cdiv(a, b):
    return -(-a // b)


def _round_up(a, b):
    return _cdiv(a, b) * b


def _mse_loss_kernel(x_ref, partial_ref, acc_ref, *, num_cols):
    """Accumulate sum(x * (x - 2*target)) over one lane-dense tile.

    Slab width W is a multiple of `num_cols`, so a flat element in lane `l`
    came from original column `l % num_cols`; column 0 is the positive logit
    (target 1), the rest target 0.  Zero padding contributes exactly 0.
    """
    t = pl.program_id(1)

    @pl.when(t == 0)
    def _init():
        acc_ref[...] = jnp.zeros_like(acc_ref)

    x = x_ref[...].astype(jnp.float32)                       # (tile_rows, W)
    w = x.shape[-1]
    # Tiny (1, W) constant row: 2.0 on lanes holding column-0 (positive) logits.
    lane = lax.broadcasted_iota(jnp.int32, (1, w), 1)
    two_tgt = jnp.where(lane % num_cols == 0, 2.0, 0.0).astype(jnp.float32)

    # sum((x - t)^2) == sum(x * (x - 2t)) + (#ones); the "+B" is added in the
    # wrapper using the true global batch size.
    acc_ref[...] += jnp.sum(x * (x - two_tgt))

    @pl.when(t == pl.num_programs(1) - 1)
    def _finalize():
        # Lane-dense (8, 128) partial-sum block for this chunk (value replicated).
        partial_ref[...] = jnp.broadcast_to(acc_ref[...], partial_ref.shape)


def mse_loss(y_pred, y_true=None, *, num_chunks=2):
    """Pallas TPU implementation of MSELoss.forward (y_true is unused)."""
    del y_true
    batch, num_cols = y_pred.shape
    n = batch * num_cols
    itemsize = np.dtype(y_pred.dtype).itemsize

    # Lane-dense slab width: lcm(num_cols, 128).
    slab_w = (num_cols * _LANES) // math.gcd(num_cols, _LANES)
    rows_needed = _cdiv(n, slab_w)

    # Tile rows: multiple of 8 sublanes, block bytes <= ~4 MiB so the
    # double-buffered pipeline stays far below v7x's scoped VMEM limit.
    rows_by_bytes = max(
        _SUBLANES,
        (_TARGET_BLOCK_BYTES // (slab_w * itemsize)) // _SUBLANES * _SUBLANES,
    )
    tile_rows = max(_SUBLANES, min(rows_by_bytes, _round_up(rows_needed, _SUBLANES)))

    tiles = _cdiv(rows_needed, tile_rows)
    num_chunks = max(1, min(num_chunks, tiles))  # parallel chunks (2 TCs on v7x)
    steps = _cdiv(tiles, num_chunks)
    rows_padded = num_chunks * steps * tile_rows
    total_padded = rows_padded * slab_w

    # Layout plumbing only: flatten + zero-pad to the lane-dense slab.
    flat = jnp.ravel(y_pred)
    pad = total_padded - n
    if pad:
        flat = jnp.pad(flat, (0, pad))
    slab = jnp.reshape(flat, (rows_padded, slab_w))

    kernel = functools.partial(_mse_loss_kernel, num_cols=num_cols)
    partials = pl.pallas_call(
        kernel,
        out_shape=jax.ShapeDtypeStruct((num_chunks * _SUBLANES, _LANES), jnp.float32),
        grid_spec=pltpu.PrefetchScalarGridSpec(
            num_scalar_prefetch=0,
            grid=(num_chunks, steps),
            in_specs=[
                pl.BlockSpec((tile_rows, slab_w), lambda c, t: (c * steps + t, 0))
            ],
            out_specs=pl.BlockSpec((_SUBLANES, _LANES), lambda c, t: (c, 0)),
            scratch_shapes=[pltpu.VMEM((1, 1), jnp.float32)],
        ),
        compiler_params=pltpu.CompilerParams(
            dimension_semantics=("parallel", "arbitrary"),
            vmem_limit_bytes=32 * 1024 * 1024,
        ),
        cost_estimate=pl.CostEstimate(
            flops=3 * total_padded,
            transcendentals=0,
            bytes_accessed=total_padded * itemsize
            + num_chunks * _SUBLANES * _LANES * 4,
        ),
    )(slab)

    # sum((x - t)^2) = sum(x*(x - 2t)) + batch  (target has exactly `batch` ones)
    chunk_sums = partials[::_SUBLANES, 0]            # one value per chunk
    total = jnp.sum(chunk_sums) + jnp.float32(batch)
    return total * (0.5 / batch)                     # 1/(2B) folded into one mul


def _reference(y_pred):
    pos = y_pred[:, 0].astype(jnp.float32)
    neg = y_pred[:, 1:].astype(jnp.float32)
    pos_loss = (pos - 1.0) ** 2 / 2.0
    neg_loss = jnp.sum(neg ** 2, axis=-1) / 2.0
    return jnp.mean(pos_loss + neg_loss)


if __name__ == "__main__":
    key = jax.random.PRNGKey(0)
    k1, _ = jax.random.split(key)
    batch, num_negs = 8, 4
    y_pred = jax.random.normal(k1, (batch, 1 + num_negs), dtype=jnp.float32)
    y_true = jnp.concatenate(
        [jnp.ones((batch, 1), jnp.float32), jnp.zeros((batch, num_negs), jnp.float32)],
        axis=1,
    )  # unused by the loss, present to mirror the PyTorch signature

    loss = jax.block_until_ready(mse_loss(y_pred, y_true))
    ref = jax.block_until_ready(_reference(y_pred))

    assert jnp.allclose(loss, ref, rtol=1e-5, atol=1e-5), (loss, ref)
    print("KERNEL_OK")
</pallas_src>

<mosaic_0001>
module attributes {stable_mosaic.version = 11 : i64} {
  func.func @_mse_loss_kernel(%arg0: i32, %arg1: i32, %arg2: memref<8x640xf32, #tpu.memory_space<vmem>>, %arg3: memref<8x128xf32, #tpu.memory_space<vmem>>, %arg4: memref<1x1xf32, #tpu.memory_space<vmem>>) attributes {dimension_semantics = [#tpu.dimension_semantics<parallel>, #tpu.dimension_semantics<arbitrary>], iteration_bounds = array<i64: 1, 1>, scalar_prefetch = 0 : i64, scratch_operands = 1 : i64, tpu.core_type = #tpu.core_type<tc>, window_params = [{transform_indices = @transform_0, window_bounds = array<i64: 8, 640>}, {transform_indices = @transform_1, window_bounds = array<i64: 8, 128>}]} {
    %c0_i32 = arith.constant 0 : i32
    %0 = arith.cmpi eq, %arg1, %c0_i32 : i32
    %1 = arith.extui %0 : i1 to i32
    %c0_i32_0 = arith.constant 0 : i32
    %2 = arith.cmpi ne, %1, %c0_i32_0 : i32
    scf.if %2 {
      %cst_15 = arith.constant 0.000000e+00 : f32
      %40 = vector.broadcast %cst_15 : f32 to vector<1x1xf32>
      %c0_16 = arith.constant 0 : index
      %c0_17 = arith.constant 0 : index
      %41 = vector.load %arg4[%c0_16, %c0_17] : memref<1x1xf32, #tpu.memory_space<vmem>>, vector<1x1xf32>
      tpu.vector_store %arg4[%c0_16, %c0_17], %40 {strides = array<i32>} : memref<1x1xf32, #tpu.memory_space<vmem>>, vector<1x1xf32>,
    } else {
    }
    %c0 = arith.constant 0 : index
    %c0_1 = arith.constant 0 : index
    %3 = vector.load %arg2[%c0, %c0_1] : memref<8x640xf32, #tpu.memory_space<vmem>>, vector<8x640xf32>
    %4 = tpu.iota {dimensions = array<i32: 1>} : vector<1x640xi32>
    %c5_i32 = arith.constant 5 : i32
    %c0_i32_2 = arith.constant 0 : i32
    %5 = arith.cmpi eq, %c5_i32, %c0_i32_2 : i32
    %c1_i32 = arith.constant 1 : i32
    %6 = arith.select %5, %c1_i32, %c5_i32 : i32
    %7 = vector.broadcast %6 : i32 to vector<1x640xi32>
    %8 = arith.remsi %4, %7 : vector<1x640xi32>
    %c0_i32_3 = arith.constant 0 : i32
    %9 = vector.broadcast %c0_i32_3 : i32 to vector<1x640xi32>
    %10 = arith.cmpi ne, %8, %9 : vector<1x640xi32>
    %c0_i32_4 = arith.constant 0 : i32
    %11 = vector.broadcast %c0_i32_4 : i32 to vector<1x640xi32>
    %12 = arith.cmpi slt, %8, %11 : vector<1x640xi32>
    %c0_i32_5 = arith.constant 0 : i32
    %13 = arith.cmpi slt, %6, %c0_i32_5 : i32
    %14 = vector.broadcast %13 : i1 to vector<1x640xi1>
    %15 = vector.broadcast %14 : vector<1x640xi1> to vector<1x640xi1>
    %16 = arith.xori %12, %15 : vector<1x640xi1>
    %17 = arith.andi %16, %10 : vector<1x640xi1>
    %18 = vector.broadcast %6 : i32 to vector<1x640xi32>
    %19 = arith.addi %8, %18 : vector<1x640xi32>
    %20 = arith.select %17, %19, %8 : vector<1x640xi1>, vector<1x640xi32>
    %c0_i32_6 = arith.constant 0 : i32
    %21 = vector.broadcast %c0_i32_6 : i32 to vector<1x640xi32>
    %22 = arith.cmpi eq, %20, %21 : vector<1x640xi32>
    %cst = arith.constant 2.000000e+00 : f32
    %cst_7 = arith.constant 0.000000e+00 : f32
    %23 = vector.broadcast %cst : f32 to vector<1x640xf32>
    %24 = vector.broadcast %cst_7 : f32 to vector<1x640xf32>
    %25 = arith.select %22, %23, %24 : vector<1x640xi1>, vector<1x640xf32>
    %c0_8 = arith.constant 0 : index
    %c0_9 = arith.constant 0 : index
    %26 = vector.load %arg4[%c0_8, %c0_9] : memref<1x1xf32, #tpu.memory_space<vmem>>, vector<1x1xf32>
    %27 = vector.broadcast %25 : vector<1x640xf32> to vector<8x640xf32>
    %28 = arith.subf %3, %27 : vector<8x640xf32>
    %29 = arith.mulf %3, %28 : vector<8x640xf32>
    %30 = vector.shape_cast %29 : vector<8x640xf32> to vector<1x8x640xf32>
    %cst_10 = arith.constant dense<0.000000e+00> : vector<1xf32>
    %31 = vector.multi_reduction <add>, %30, %cst_10 [1, 2] : vector<1x8x640xf32> to vector<1xf32>
    %32 = vector.shape_cast %31 : vector<1xf32> to vector<1x1x1xf32>
    %33 = vector.extract %32[0, 0, 0] : f32 from vector<1x1x1xf32>
    %34 = vector.broadcast %33 : f32 to vector<1x1xf32>
    %35 = arith.addf %26, %34 : vector<1x1xf32>
    %c0_11 = arith.constant 0 : index
    %c0_12 = arith.constant 0 : index
    %36 = vector.load %arg4[%c0_11, %c0_12] : memref<1x1xf32, #tpu.memory_space<vmem>>, vector<1x1xf32>
    tpu.vector_store %arg4[%c0_11, %c0_12], %35 {strides = array<i32>} : memref<1x1xf32, #tpu.memory_space<vmem>>, vector<1x1xf32>,
    %c0_i32_13 = arith.constant 0 : i32
    %37 = arith.cmpi eq, %arg1, %c0_i32_13 : i32
    %38 = arith.extui %37 : i1 to i32
    %c0_i32_14 = arith.constant 0 : i32
    %39 = arith.cmpi ne, %38, %c0_i32_14 : i32
    scf.if %39 {
      %c0_15 = arith.constant 0 : index
      %c0_16 = arith.constant 0 : index
      %40 = vector.load %arg4[%c0_15, %c0_16] : memref<1x1xf32, #tpu.memory_space<vmem>>, vector<1x1xf32>
      %41 = vector.shape_cast %40 : vector<1x1xf32> to vector<1x1xf32>
      %42 = vector.broadcast %41 : vector<1x1xf32> to vector<8x128xf32>
      %c0_17 = arith.constant 0 : index
      %c0_18 = arith.constant 0 : index
      %43 = vector.load %arg3[%c0_17, %c0_18] : memref<8x128xf32, #tpu.memory_space<vmem>>, vector<8x128xf32>
      tpu.vector_store %arg3[%c0_17, %c0_18], %42 {strides = array<i32>} : memref<8x128xf32, #tpu.memory_space<vmem>>, vector<8x128xf32>,
    } else {
    }
    return
  }
  func.func @transform_0(%arg0: i32, %arg1: i32) -> (i32, i32) {
    %c1_i32 = arith.constant 1 : i32
    %0 = arith.muli %arg0, %c1_i32 : i32
    %1 = arith.addi %0, %arg1 : i32
    %c0_i32 = arith.constant 0 : i32
    %c0_i32_0 = arith.constant 0 : i32
    return %1, %c0_i32 : i32, i32
  }
  func.func @transform_1(%arg0: i32, %arg1: i32) -> (i32, i32) {
    %c0_i32 = arith.constant 0 : i32
    %c0_i32_0 = arith.constant 0 : i32
    return %arg0, %c0_i32 : i32, i32
  }
}

</mosaic_0001>

<bundles_post_ra>
// kernel: tpu_custom_call.1
= control target key start
LH: loop header
LB: loop body
LE: loop exit
PB: predicated region body
PF: predicated region fallthrough
CT: control target
= control target key end

     0   :  { %6 = vsyncpa [#allocation4], 0  ;;  %s312_s0 = inlined_call_operand.hbm [shape: f32[8,640], index: 0, kind: input, shape index: {}]   ;;  %s313_s1 = inlined_call_operand.hbm [shape: f32[8,128], index: 1, kind: output, shape index: {}]  }
   0x1   :  { %7 = vsyncpa [#allocation5], 0  ;;  %s252_s6 = smov [#allocation3]  }
   0x2   :  { %s18_s7 = sshll.u32 %s252_s6, 4  ;;  %s19_s7 = int_to_ptr.vmem [resolvable:$true] %s18_s7 }
   0x3   :  { %s216_s8 = scalar_lea.vmem %s19_s7, 640  ;;  %p221_p1 = scmp.lt.s32.totalorder %s19_s7, %s19_s7 }
   0x4   :  { %p217_p0 = scmp.ne.s32.totalorder %s19_s7, %s216_s8  ;;  %p222_p2 = scmp.lt.s32.totalorder %s216_s8, %s216_s8 }
   0x6   :  { %p223_p3 = por %p222_p2, %p221_p1 }
   0x8   :  { %p224_p4 = pnand %p223_p3, %p217_p0 }
   0xa   :  { %227 = shalt.err (!%p224_p4)
}
   0xb   :  { %21 = dma.hbm_to_vmem [thread:$0]  %s312_s0, 640, %s19_s7, [#allocation4]  }
   0xc   :  { %248 = dma.done.wait [#allocation4], 640  }
   0xd   :  { %249 = vsyncadd [#allocation4], 4294966656  ;;  %v37_v0 = vlaneseq  ;;  %v32_v38 = vld [vmem:[#allocation3] sm:$0xff]  ;;  %v33_v42 = vld [vmem:[#allocation3 + $0x8] sm:$0xff]  ;;  %v253_v48 = vmov 0.0   ;;  %s255_s11 = smov [#allocation6]  }
   0xe   :  { %v34_v43 = vld [vmem:[#allocation3 + $0x10] sm:$0xff]  ;;  %v35_v46 = vld [vmem:[#allocation3 + $0x18] sm:$0xff]  ;;  %v36_v50 = vld [vmem:[#allocation3 + $0x20] sm:$0xff]  ;;  %s181_s12 = sshll.u32 %s255_s11, 4  ;;  %s182_s12 = int_to_ptr.vmem [resolvable:$true] %s181_s12 }
   0xf   :  { %v38_v1 = vand.u32 127, %v37_v0  ;;  %s228_s13 = scalar_lea.vmem %s182_s12, 128  ;;  %p233_p6 = scmp.lt.s32.totalorder %s182_s12, %s182_s12 }
  0x10   :  { %p229_p5 = scmp.ne.s32.totalorder %s182_s12, %s228_s13  ;;  %p234_p7 = scmp.lt.s32.totalorder %s228_s13, %s228_s13 }
  0x11   :  { %v39_v2 = vadd.s32 128, %v38_v1  ;;  %v40_v3 = vadd.s32 256, %v38_v1  ;;  %v41_v4 = vadd.s32 384, %v38_v1  ;;  %v42_v5 = vadd.s32 512, %v38_v1 }
  0x12   :  { %v269_v6 = vmul.u32.u64.low 3435973837, %v38_v1  ;;  %v270_v7 = vmul.u32.u64.high 3435973837, %v38_v1, %v269_v6  ;;  %p235_p8 = por %p234_p7, %p233_p6 }
  0x13   :  { %v272_v8 = vmul.u32.u64.low 3435973837, %v39_v2  ;;  %v273_v9 = vmul.u32.u64.high 3435973837, %v39_v2, %v272_v8  ;;  %v275_v10 = vmul.u32.u64.low 3435973837, %v40_v3  ;;  %v276_v11 = vmul.u32.u64.high 3435973837, %v40_v3, %v275_v10 }
  0x14   :  { %v278_v12 = vmul.u32.u64.low 3435973837, %v41_v4  ;;  %v279_v13 = vmul.u32.u64.high 3435973837, %v41_v4, %v278_v12  ;;  %v281_v14 = vmul.u32.u64.low 3435973837, %v42_v5  ;;  %v282_v15 = vmul.u32.u64.high 3435973837, %v42_v5, %v281_v14  ;;  %p236_p9 = pnand %p235_p8, %p229_p5 }
  0x15   :  { %v49_v16 = vshrl.u32 %v270_v7, 2  ;;  %v60_v17 = vshrl.u32 %v273_v9, 2  ;;  %v71_v18 = vshrl.u32 %v276_v11, 2 }
  0x16   :  { %v82_v20 = vshrl.u32 %v279_v13, 2  ;;  %v93_v23 = vshrl.u32 %v282_v15, 2 }
  0x17   :  { %v50_v19 = vmul.u32 5, %v49_v16  ;;  %v61_v21 = vmul.u32 5, %v60_v17 }
  0x18   :  { %v72_v22 = vmul.u32 5, %v71_v18  ;;  %v83_v25 = vmul.u32 5, %v82_v20 }
  0x19   :  { %v51_v24 = vsub.s32 %v38_v1, %v50_v19  ;;  %v62_v26 = vsub.s32 %v39_v2, %v61_v21  ;;  %v94_v28 = vmul.u32 5, %v93_v23 }
  0x1a   :  { %v73_v27 = vsub.s32 %v40_v3, %v72_v22  ;;  %v84_v29 = vsub.s32 %v41_v4, %v83_v25 }
  0x1b   :  { %vm98_vm0 = vcmp.ne.s32.totalorder %v51_v24, 0  ;;  %vm103_vm1 = vcmp.lt.s32.totalorder %v51_v24, 0  ;;  %v113_v30 = vadd.s32 5, %v51_v24  ;;  %v95_v31 = vsub.s32 %v42_v5, %v94_v28 }
  0x1c   :  { %vm99_vm2 = vcmp.ne.s32.totalorder %v62_v26, 0  ;;  %vm100_vm3 = vcmp.ne.s32.totalorder %v73_v27, 0  ;;  %vm104_vm4 = vcmp.lt.s32.totalorder %v62_v26, 0  ;;  %vm289_vm5 = vmand %vm103_vm1, %vm98_vm0  ;;  %vm101_vm6 = vcmp.ne.s32.totalorder %v84_v29, 0 }
  0x1d   :  { %vm105_vm7 = vcmp.lt.s32.totalorder %v73_v27, 0  ;;  %vm106_vm8 = vcmp.lt.s32.totalorder %v84_v29, 0  ;;  %vm293_vm9 = vmand %vm104_vm4, %vm99_vm2  ;;  %v114_v34 = vadd.s32 5, %v62_v26  ;;  %vm102_vm10 = vcmp.ne.s32.totalorder %v95_v31, 0 }
  0x1e   :  { %vm107_vm11 = vcmp.lt.s32.totalorder %v95_v31, 0  ;;  %vm297_vm12 = vmand %vm105_vm7, %vm100_vm3  ;;  %v115_v36 = vadd.s32 5, %v73_v27  ;;  %v116_v37 = vadd.s32 5, %v84_v29  ;;  %v117_v39 = vadd.s32 5, %v95_v31 }
  0x1f   :  { %vm111_vm13 = vmand %vm106_vm8, %vm101_vm6  ;;  %v118_v40 = vsel %vm289_vm5, %v113_v30, %v51_v24  ;;  %v119_v41 = vsel %vm293_vm9, %v114_v34, %v62_v26  ;;  %vm30_vm4 = vcmask 0   ;;  %v254_v5 = vmov 0  }
  0x20   :  { %vm112_vm14 = vmand %vm107_vm11, %vm102_vm10  ;;  %v120_v44 = vsel %vm297_vm12, %v115_v36, %v73_v27  ;;  %v121_v45 = vsel %vm111_vm13, %v116_v37, %v84_v29  ;;  %vm123_vm15 = vcmp.eq.s32.totalorder %v118_v40, 0  ;;  %vm124_vm0 = vcmp.eq.s32.totalorder %v119_v41, 0  ;;  %31 = vst.msk [vmem:[#allocation2] sm:$0x1] %vm30_vm4, %v253_v48  ;;  %207 = vset.pattern.permute.xlu0 %v254_v5 }
  0x21   :  { %v122_v47 = vsel %vm112_vm14, %v117_v39, %v95_v31  ;;  %vm125_vm1 = vcmp.eq.s32.totalorder %v120_v44, 0  ;;  %vm126_vm2 = vcmp.eq.s32.totalorder %v121_v45, 0  ;;  %v128_v49 = vsel %vm123_vm15, 2.0, %v253_v48 }
  0x22   :  { %vm127_vm3 = vcmp.eq.s32.totalorder %v122_v47, 0  ;;  %v129_v51 = vsel %vm124_vm0, 2.0, %v253_v48  ;;  %v130_v52 = vsel %vm125_vm1, 2.0, %v253_v48  ;;  %v131_v53 = vsel %vm126_vm2, 2.0, %v253_v48 }
  0x23   :  { %v132_v54 = vsel %vm127_vm3, 2.0, %v253_v48  ;;  %v134_v55 = vsub.f32 %v32_v38, %v128_v49  ;;  %v135_v56 = vsub.f32 %v33_v42, %v129_v51  ;;  %v136_v57 = vsub.f32 %v34_v43, %v130_v52 }
  0x24   :  { %v137_v58 = vsub.f32 %v35_v46, %v131_v53  ;;  %v138_v59 = vsub.f32 %v36_v50, %v132_v54 }
  0x25   :  { %v139_v60 = vmul.f32 %v134_v55, %v32_v38  ;;  %v140_v61 = vmul.f32 %v135_v56, %v33_v42  ;;  %v141_v62 = vmul.f32 %v136_v57, %v34_v43 }
  0x26   :  { %v142_v63 = vmul.f32 %v137_v58, %v35_v46  ;;  %v143_v1 = vmul.f32 %v138_v59, %v36_v50 }
  0x27   :  { %v144_v0 = vadd.f32 %v140_v61, %v139_v60  ;;  %v133_v13 = vld [vmem:[#allocation2] sm:$0x1] }
  0x29   :  { %v145_v2 = vadd.f32 %v144_v0, %v141_v62 }
  0x2b   :  { %v146_v3 = vadd.f32 %v145_v2, %v142_v63 }
  0x2d   :  { %v147_v4 = vadd.f32 %v146_v3, %v143_v1 }
  0x2f   :  { %148 = vadd.xlane.f32.xlu0 %v147_v4 }
  0xb8   :  { %v149_v6 = vpop.xlane.xlu0 %148 }
  0xb9   :  { %v150_v7 = vrot.slane %v149_v6, 4 }
  0xbb   :  { %v151_v8 = vadd.f32 %v150_v7, %v149_v6 }
  0xbd   :  { %v152_v9 = vrot.slane %v151_v8, 2 }
  0xbf   :  { %v153_v10 = vadd.f32 %v152_v9, %v151_v8 }
  0xc1   :  { %v154_v11 = vrot.slane %v153_v10, 1 }
  0xc3   :  { %v155_v12 = vadd.f32 %v154_v11, %v153_v10 }
  0xc5   :  { %201 = vpush %v155_v12 }
  0xf6   :  { %s202_s0 = spop %201 }
  0xf7   :  { %v157_v14 = vstv %s202_s0 }
  0xf8   :  { %v158_v15 = vadd.f32 %v157_v14, %v133_v13 }
  0xfa   :  { %160 = vst.msk [vmem:[#allocation2] sm:$0x1] %vm30_vm4, %v158_v15 }
 0x101   :  { %v190_v16 = vld [vmem:[#allocation2] ss:$0 sm:$0xff] }
 0x102   :  { %171 = vperm.xlu0 %207, %v190_v16  }
 0x17d   :  { %v172_v17 = vpop.permute.xlu0 %171 }
 0x17e   :  { %174 = vst [vmem:[#allocation6] sm:$0xff] %v172_v17 }
 0x17f   :  { %239 = shalt.err (!%p236_p9)
}
 0x180   :  { %184 = dma.vmem_to_hbm [thread:$0]  %s182_s12, 128, %s313_s1, [#allocation5]  }
 0x181   :  { %250 = dma.done.wait [#allocation5], 128  }
 0x182   :  { %251 = vsyncadd [#allocation5], 4294967168 }
 0x183   :  { %188 = vsyncpa [#allocation4], 1 }
 0x184   :  { %189 = vsyncpa [#allocation5], 1 }

</bundles_post_ra>
